<compile_context>
chip_gen: v6e
topology: v6e:2x2x1
jax: 0.10.0
libtpu: 0.0.40
codegen_flags: <defaults>
</compile_context>

<pallas_src>
import numpy as np
import jax
import jax.numpy as jnp
from jax.experimental import pallas as pl
from jax.experimental.pallas import tpu as pltpu


TILE_A = 1024                     # anchor-axis tile (multiple of 128)
_GEOM_THRESH = 5.0e5              # host threshold recovering the geometry mask from cost
_VMEM_LIMIT = 32 * 1024 * 1024    # keep <= 32 MiB scoped (v7x has only 64 MiB VMEM)


# ----------------------------------------------------------------------------- helpers
def _round_up(n, m):
    return ((n + m - 1) // m) * m


def _full_spec(shape):
    nd = len(shape)
    return pl.BlockSpec(shape, lambda i, _nd=nd: (0,) * _nd)


def _sigmoid(x):
    # tanh-based sigmoid: numerically stable, divide-free (EUP tanh, no VPU divide).
    return 0.5 * (jnp.tanh(0.5 * x) + 1.0)


# ----------------------------------------------------------------------------- kernel 1: decode (box rows only)
def _decode_kernel(o_ref, aux_ref, out_ref):
    # o: (>=4, T) raw head rows (only rows 0:4 used)
    # aux rows: 0 x-shift, 1 y-shift, 2 stride, 3 stride
    sh = aux_ref[0:2, :]
    st = aux_ref[2:4, :]
    out_ref[0:2, :] = (o_ref[0:2, :] + sh) * st
    out_ref[2:4, :] = jnp.exp(o_ref[2:4, :]) * st


def decode_pallas(raw_p, aux):
    B, n_ch, Ap = raw_p.shape
    # only the 4 box rows are needed; read an 8-sublane-aligned channel block
    ch_blk = n_ch if n_ch < 8 else 8
    grid = (B, Ap // TILE_A)
    return pl.pallas_call(
        _decode_kernel,
        out_shape=jax.ShapeDtypeStruct((B, 4, Ap), jnp.float32),
        grid=grid,
        in_specs=[
            pl.BlockSpec((None, ch_blk, TILE_A), lambda b, a: (b, 0, a)),
            pl.BlockSpec((8, TILE_A), lambda b, a: (0, a)),
        ],
        out_specs=pl.BlockSpec((None, 4, TILE_A), lambda b, a: (b, 0, a)),
        compiler_params=pltpu.CompilerParams(
            dimension_semantics=("parallel", "parallel"),
            vmem_limit_bytes=_VMEM_LIMIT),
    )(raw_p, aux)


# ----------------------------------------------------------------------------- kernel 2: SimOTA cost (batched)
def _cost_kernel(gt_box_ref, gt_oh_ref, box_ref, raw_ref, aux_ref, iou_ref, cost_ref):
    gt = gt_box_ref[...]                       # (Gp, 4) gt cxcywh
    pb = box_ref[...]                          # (4, T)  decoded pred cxcywh
    g_cx, g_cy, g_w, g_h = gt[:, 0:1], gt[:, 1:2], gt[:, 2:3], gt[:, 3:4]
    p_cx, p_cy, p_w, p_h = pb[0:1, :], pb[1:2, :], pb[2:3, :], pb[3:4, :]

    # pairwise IoU (Gp, T)
    tl_x = jnp.maximum(g_cx - 0.5 * g_w, p_cx - 0.5 * p_w)
    tl_y = jnp.maximum(g_cy - 0.5 * g_h, p_cy - 0.5 * p_h)
    br_x = jnp.minimum(g_cx + 0.5 * g_w, p_cx + 0.5 * p_w)
    br_y = jnp.minimum(g_cy + 0.5 * g_h, p_cy + 0.5 * p_h)
    en = ((tl_x < br_x) & (tl_y < br_y)).astype(jnp.float32)
    area_i = (br_x - tl_x) * (br_y - tl_y) * en
    iou = area_i * pl.reciprocal(g_w * g_h + p_w * p_h - area_i + 1e-8, approx=True)
    iou_ref[...] = iou

    # center-radius geometry constraint; xc/yc/cd precomputed on host (aux rows 4..6)
    xc = aux_ref[4:5, :]
    yc = aux_ref[5:6, :]
    cd = aux_ref[6:7, :]
    c_min = jnp.minimum(jnp.minimum(xc - (g_cx - cd), (g_cx + cd) - xc),
                        jnp.minimum(yc - (g_cy - cd), (g_cy + cd) - yc))
    geom = (c_min > 0.0).astype(jnp.float32)

    # classification cost: sum_c BCE(sqrt(sig(cls)*sig(obj)), one_hot)
    #   = -( t @ log_p + (1 - t) @ log_(1-p) )        (two small MXU matmuls)
    obj = raw_ref[4:5, :]                              # (1, T) raw obj logit
    cls = raw_ref[5:, :]                               # (C, T) raw cls logits
    p = jnp.sqrt(_sigmoid(cls) * _sigmoid(obj))
    log_p = jnp.maximum(jnp.log(p), -100.0)            # torch BCE clamp
    log_1mp = jnp.maximum(jnp.log(1.0 - p), -100.0)
    t = gt_oh_ref[...]                                 # (Gp, C) one-hot
    cls_cost = -(jnp.dot(t, log_p, preferred_element_type=jnp.float32)
                 + jnp.dot(1.0 - t, log_1mp, preferred_element_type=jnp.float32))
    iou_cost = -jnp.log(iou + 1e-8)
    cost_ref[...] = cls_cost + 3.0 * iou_cost + 1e6 * (1.0 - geom)


def cost_pallas(gt_box, gt_oh, box_dec, raw_p, aux):
    B, Gp, _ = gt_box.shape
    C = gt_oh.shape[2]
    n_ch = raw_p.shape[1]
    Ap = raw_p.shape[2]
    grid = (B, Ap // TILE_A)
    pair_spec = pl.BlockSpec((None, Gp, TILE_A), lambda b, a: (b, 0, a))
    out_shape = (jax.ShapeDtypeStruct((B, Gp, Ap), jnp.float32),
                 jax.ShapeDtypeStruct((B, Gp, Ap), jnp.float32))
    return pl.pallas_call(
        _cost_kernel,
        out_shape=out_shape,
        grid=grid,
        in_specs=[
            pl.BlockSpec((None, Gp, 4), lambda b, a: (b, 0, 0)),
            pl.BlockSpec((None, Gp, C), lambda b, a: (b, 0, 0)),
            pl.BlockSpec((None, 4, TILE_A), lambda b, a: (b, 0, a)),
            pl.BlockSpec((None, n_ch, TILE_A), lambda b, a: (b, 0, a)),
            pl.BlockSpec((8, TILE_A), lambda b, a: (0, a)),
        ],
        out_specs=(pair_spec, pair_spec),
        compiler_params=pltpu.CompilerParams(
            dimension_semantics=("parallel", "parallel"),
            vmem_limit_bytes=_VMEM_LIMIT),
    )(gt_box, gt_oh, box_dec, raw_p, aux)


# ----------------------------------------------------------------------------- kernel 3: losses
def _loss_kernel(pb_ref, rt_ref, fgm_ref, orp_ref, l1t_ref,
                 objl_ref, objt_ref, clsl_ref, clst_ref, out_ref):
    fgm = fgm_ref[...]                              # (1, Nf) fg validity mask
    p = pb_ref[...]                                 # (4, Nf) predicted cxcywh (fg anchors)
    t = rt_ref[...]                                 # (4, Nf) target cxcywh
    tl_x = jnp.maximum(p[0:1] - 0.5 * p[2:3], t[0:1] - 0.5 * t[2:3])
    tl_y = jnp.maximum(p[1:2] - 0.5 * p[3:4], t[1:2] - 0.5 * t[3:4])
    br_x = jnp.minimum(p[0:1] + 0.5 * p[2:3], t[0:1] + 0.5 * t[2:3])
    br_y = jnp.minimum(p[1:2] + 0.5 * p[3:4], t[1:2] + 0.5 * t[3:4])
    en = ((tl_x < br_x) & (tl_y < br_y)).astype(jnp.float32)
    area_i = (br_x - tl_x) * (br_y - tl_y) * en
    area_u = p[2:3] * p[3:4] + t[2:3] * t[3:4] - area_i
    # TODO(synk): `calculate_iou` source not provided; standard YOLOX cxcywh IoU (eps=1e-16) used.
    iou = area_i / (area_u + 1e-16)

    def bce_logits(x, tt):
        return jnp.maximum(x, 0.0) - x * tt + jnp.log(1.0 + jnp.exp(-jnp.abs(x)))

    # obj pads use logit=-50 / target=0 -> contribution is exactly 0, no mask needed
    out_ref[0, 0] = jnp.sum((1.0 - iou * iou) * fgm)                             # IoU loss sum
    out_ref[0, 1] = jnp.sum(bce_logits(objl_ref[...], objt_ref[...]))            # obj BCE sum
    out_ref[0, 2] = jnp.sum(bce_logits(clsl_ref[...], clst_ref[...]) * fgm)      # cls BCE sum
    out_ref[0, 3] = jnp.sum(jnp.abs(orp_ref[...] - l1t_ref[...]) * fgm)          # L1 sum


def loss_pallas(pb_t, rt_t, fgm, orp_t, l1_t, obj_l, obj_t, cls_l, cls_t):
    args = [jnp.asarray(a, jnp.float32)
            for a in (pb_t, rt_t, fgm, orp_t, l1_t, obj_l, obj_t, cls_l, cls_t)]
    return pl.pallas_call(
        _loss_kernel,
        out_shape=jax.ShapeDtypeStruct((1, 4), jnp.float32),
        grid=(1,),
        in_specs=[_full_spec(a.shape) for a in args],
        out_specs=pl.BlockSpec(memory_space=pltpu.MemorySpace.SMEM),
        compiler_params=pltpu.CompilerParams(vmem_limit_bytes=_VMEM_LIMIT),
    )(*args)


# ----------------------------------------------------------------------------- YOLOX loss (host orchestration)
class YOLOXLossPallas:
    def __init__(self, l1_activate_epoch, cur_epoch=None, **kwargs):
        self.l1_activate_epoch = l1_activate_epoch
        self.cur_epoch = cur_epoch
        self.use_l1 = False

    def use_l1_update(self):
        if self.cur_epoch is None:
            return True
        return self.cur_epoch.value >= self.l1_activate_epoch

    @staticmethod
    def _get_l1_target(l1_target, gt, stride, x_shifts, y_shifts, eps=1e-8):
        l1_target[:, 0] = gt[:, 0] / stride - x_shifts
        l1_target[:, 1] = gt[:, 1] / stride - y_shifts
        l1_target[:, 2] = np.log(gt[:, 2] / stride + eps)
        l1_target[:, 3] = np.log(gt[:, 3] / stride + eps)
        return l1_target

    # ---- SimOTA dynamic-k matching (glue: data-dependent top-k / shapes) ----
    # TODO(synk): dynamic-k top-k assignment has no clean static-shape Pallas equivalent; kept in NumPy.
    @staticmethod
    def _simota_matching(cost, ious, gt_classes, num_gt, fg_mask):
        matching = np.zeros_like(cost, dtype=np.uint8)
        n_candidate_k = min(10, ious.shape[1])
        topk_ious = -np.sort(-ious, axis=1)[:, :n_candidate_k]
        dynamic_ks = np.clip(topk_ious.sum(1).astype(np.int32), 1, None)
        for gt_idx in range(num_gt):
            k = int(dynamic_ks[gt_idx])
            pos_idx = np.argsort(cost[gt_idx], kind="stable")[:k]
            matching[gt_idx, pos_idx] = 1
        anchor_matching_gt = matching.sum(0)
        if anchor_matching_gt.size and anchor_matching_gt.max() > 1:
            mm = anchor_matching_gt > 1
            cost_argmin = np.argmin(cost[:, mm], axis=0)
            matching[:, mm] = 0
            matching[cost_argmin, mm] = 1
        fg_mask_inboxes = anchor_matching_gt > 0
        num_fg = int(fg_mask_inboxes.sum())
        fg_mask_new = fg_mask.copy()
        fg_mask_new[fg_mask] = fg_mask_inboxes
        matched_gt_inds = matching[:, fg_mask_inboxes].argmax(0)
        gt_matched_classes = gt_classes[matched_gt_inds]
        pred_ious = (matching * ious).sum(0)[fg_mask_inboxes]
        return num_fg, gt_matched_classes, pred_ious, matched_gt_inds, fg_mask_new

    # ---- forward ----
    def __call__(self, out, target):
        self.use_l1 = self.use_l1_update()
        preds = out['pred']
        C = int(target['num_classes'])
        img_size = int(target['img_size'])
        gt = target['gt']
        B = int(preds[0].shape[0])
        n_ch = 5 + C

        # ---- flatten levels on device: (B, C, H, W) -> (B, C, A); grids on host ----
        raws, grids, strides_list = [], [], []
        for o in preds:
            h, w = int(o.shape[-2]), int(o.shape[-1])
            stride = img_size // w          # assumes square feature maps / input (same as harness)
            raws.append(jnp.reshape(jnp.asarray(o, jnp.float32), (B, n_ch, h * w)))
            ys, xs = np.meshgrid(np.arange(h), np.arange(w), indexing='ij')
            grids.append(np.stack([xs.ravel(), ys.ravel()], 0).astype(np.float32))
            strides_list.append(np.full((h * w,), float(stride), np.float32))
        raw = jnp.concatenate(raws, axis=2)            # (B, n_ch, A)  device
        grid = np.concatenate(grids, axis=1)           # (2, A) row0 = x, row1 = y
        strides_vec = np.concatenate(strides_list)     # (A,)
        A = int(raw.shape[2])
        Ap = _round_up(A, TILE_A)
        x_shifts, y_shifts = grid[0], grid[1]

        raw_p = jnp.pad(raw, ((0, 0), (0, 0), (0, Ap - A)))

        # combined per-anchor aux (single DMA per kernel):
        #   rows 0/1 = x/y shift, 2/3 = stride, 4/5 = anchor center x/y, 6 = 1.5*stride
        aux_np = np.zeros((8, Ap), np.float32)
        aux_np[0, :A] = x_shifts
        aux_np[1, :A] = y_shifts
        aux_np[2, :A] = strides_vec
        aux_np[3, :A] = strides_vec
        aux_np[2:4, A:] = 1.0
        aux_np[4, :A] = (x_shifts + 0.5) * strides_vec
        aux_np[5, :A] = (y_shifts + 0.5) * strides_vec
        aux_np[6, :A] = 1.5 * strides_vec
        aux_dev = jnp.asarray(aux_np)

        decoded_p = decode_pallas(raw_p, aux_dev)      # (B, 4, Ap) decoded boxes, device

        # ---- targets: xyxy -> cxcywh, pack into (B, max_samples, 5) (host) ----
        boxes_cxcywh, labels_np = [], []
        for t in gt:
            b = np.asarray(t['boxes'], np.float32).reshape(-1, 4)
            cx = (b[:, 0] + b[:, 2]) * 0.5
            cy = (b[:, 1] + b[:, 3]) * 0.5
            ww = b[:, 2] - b[:, 0]
            hh = b[:, 3] - b[:, 1]
            boxes_cxcywh.append(np.stack([cx, cy, ww, hh], 1))
            labels_np.append(np.asarray(t['labels'], np.float32).reshape(-1))
        max_samples = max(max(len(l) for l in labels_np), 1)
        labels = np.zeros((B, max_samples, 5), np.float32)
        for bi in range(B):
            n = len(labels_np[bi])
            labels[bi, :n, 1:5] = boxes_cxcywh[bi]
            labels[bi, :n, 0] = labels_np[bi]
        nlabel = ((labels.sum(2) > 0).sum(1)).astype(np.int32)
        max_gt = int(nlabel.max())

        # ---- one batched cost-kernel launch (static shapes, no per-image recompiles) ----
        if max_gt > 0:
            Gp = max(_round_up(max_gt, 8), 8)
            gt_box_p = np.zeros((B, Gp, 4), np.float32)
            gt_oh_p = np.zeros((B, Gp, C), np.float32)
            eye = np.eye(C, dtype=np.float32)
            for bi in range(B):
                ng = int(nlabel[bi])
                if ng == 0:
                    continue
                gt_box_p[bi, :ng] = labels[bi, :ng, 1:5]
                gt_oh_p[bi, :ng] = eye[labels[bi, :ng, 0].astype(np.int64)]

            # obj/cls logits are read inside the kernel from raw_p via static ref
            # slices (no device-side slice/concat copies).
            iou_dev, cost_dev = cost_pallas(
                jnp.asarray(gt_box_p), jnp.asarray(gt_oh_p),
                decoded_p, raw_p, aux_dev)

            # single device -> host sync for everything SimOTA / gathers need
            decoded_np, raw_np, iou_np, cost_np = jax.device_get(
                (decoded_p, raw, iou_dev, cost_dev))
        else:
            decoded_np, raw_np = jax.device_get((decoded_p, raw))
            iou_np = cost_np = None

        bbox_preds = np.transpose(decoded_np[:, :, :A], (0, 2, 1))   # (B, A, 4) decoded
        obj_logits = raw_np[:, 4, :]                                 # (B, A) raw obj logits
        cls_preds = np.transpose(raw_np[:, 5:, :], (0, 2, 1))        # (B, A, C) raw cls logits
        origin_preds = np.transpose(raw_np[:, :4, :], (0, 2, 1))     # (B, A, 4) raw reg

        # ---- per-image SimOTA dynamic-k matching (host) ----
        cls_targets, reg_targets, obj_targets, fg_masks, l1_targets = [], [], [], [], []
        num_fg_total = 0.0
        for bi in range(B):
            num_gt = int(nlabel[bi])
            if num_gt == 0:
                cls_targets.append(np.zeros((0, C), np.float32))
                reg_targets.append(np.zeros((0, 4), np.float32))
                obj_targets.append(np.zeros((A, 1), np.float32))
                fg_masks.append(np.zeros((A,), bool))
                if self.use_l1:
                    l1_targets.append(np.zeros((0, 4), np.float32))
                continue
            gt_boxes = labels[bi, :num_gt, 1:5]
            gt_classes = labels[bi, :num_gt, 0]
            cost_im = cost_np[bi, :num_gt, :A]
            iou_im = iou_np[bi, :num_gt, :A]
            # geometry constraint recovered from the 1e6 penalty (exact separation
            # while max(cls_cost + 3*iou_cost) << 5e5, i.e. ~100*C + 55)
            is_in = cost_im < _GEOM_THRESH
            fg_mask_geo = is_in.any(axis=0)
            cost_cand = cost_im[:, fg_mask_geo]
            iou_cand = iou_im[:, fg_mask_geo]
            num_fg_img, gmc, pred_ious, mgi, fg_mask = self._simota_matching(
                cost_cand, iou_cand, gt_classes, num_gt, fg_mask_geo)
            num_fg_total += num_fg_img
            oh = np.eye(C, dtype=np.float32)[gmc.astype(np.int64)]
            cls_targets.append(oh * pred_ious[:, None])
            obj_targets.append(fg_mask[:, None].astype(np.float32))
            reg_targets.append(gt_boxes[mgi])
            fg_masks.append(fg_mask)
            if self.use_l1:
                l1_targets.append(self._get_l1_target(
                    np.zeros((num_fg_img, 4), np.float32), gt_boxes[mgi],
                    strides_vec[fg_mask], x_shifts[fg_mask], y_shifts[fg_mask]))

        cls_targets = np.concatenate(cls_targets, 0)
        reg_targets = np.concatenate(reg_targets, 0)
        obj_targets = np.concatenate(obj_targets, 0)
        fg_masks = np.concatenate(fg_masks, 0)
        if self.use_l1:
            l1_targets = np.concatenate(l1_targets, 0)
        num_fg = max(num_fg_total, 1)

        # ---- gather fg predictions, pad (anchors on lanes, obj packed to 8 sublanes) ----
        bbox_fg = bbox_preds.reshape(-1, 4)[fg_masks]
        cls_fg = cls_preds.reshape(-1, C)[fg_masks]
        orig_fg = origin_preds.reshape(-1, 4)[fg_masks]

        Nf = bbox_fg.shape[0]
        Nfp = max(_round_up(Nf, 128), 128)
        M = B * A
        Mp = _round_up(M, 8 * 128)

        def padT(x, cols):
            o = np.zeros((x.shape[1], cols), np.float32)
            o[:, :x.shape[0]] = x.T
            return o

        def pack8(flat, total, count, fill=0.0):
            o = np.full((total,), fill, np.float32)
            o[:count] = flat
            return o.reshape(8, total // 8)

        pb_t = padT(bbox_fg, Nfp)
        rt_t = padT(reg_targets, Nfp)
        cls_l_t = padT(cls_fg, Nfp)
        cls_t_t = padT(cls_targets, Nfp)
        orp_t = padT(orig_fg, Nfp)
        l1_t = padT(l1_targets, Nfp) if self.use_l1 else np.zeros((4, Nfp), np.float32)
        fgm = np.zeros((1, Nfp), np.float32); fgm[0, :Nf] = 1.0
        # obj pads: logit=-50, target=0 -> BCE contribution exactly 0 (no mask input)
        obj_l = pack8(obj_logits.reshape(-1), Mp, M, fill=-50.0)
        obj_t = pack8(obj_targets[:, 0], Mp, M, fill=0.0)

        sums = loss_pallas(pb_t, rt_t, fgm, orp_t, l1_t, obj_l, obj_t, cls_l_t, cls_t_t)

        loss_iou = sums[0, 0] / num_fg
        loss_obj = sums[0, 1] / num_fg
        loss_cls = sums[0, 2] / num_fg
        loss_l1 = sums[0, 3] / num_fg if self.use_l1 else 0.0
        reg_weight = 5.0
        return reg_weight * loss_iou + loss_obj + loss_cls + loss_l1


# ----------------------------------------------------------------------------- main
if __name__ == "__main__":
    key = jax.random.PRNGKey(0)
    B, num_classes, img_size = 2, 3, 64
    n_ch = 5 + num_classes
    spatials = [16, 8, 4]                     # strides 4, 8, 16 (= img_size // W)
    keys = jax.random.split(key, len(spatials))
    preds = [0.5 * jax.random.normal(k, (B, n_ch, s, s), dtype=jnp.float32)
             for k, s in zip(keys, spatials)]

    gt = [
        {'boxes': jnp.array([[4., 6., 20., 28.],
                             [30., 10., 50., 40.],
                             [8., 36., 24., 60.]], dtype=jnp.float32),
         'labels': jnp.array([0., 2., 1.], dtype=jnp.float32)},
        {'boxes': jnp.array([[12., 12., 44., 44.],
                             [40., 30., 60., 56.]], dtype=jnp.float32),
         'labels': jnp.array([1., 0.], dtype=jnp.float32)},
    ]
    target = {'num_classes': num_classes, 'img_size': img_size, 'gt': gt}

    loss_fn = YOLOXLossPallas(l1_activate_epoch=1, cur_epoch=None)
    total = loss_fn({'pred': preds}, target)
    total = jax.block_until_ready(jnp.asarray(total))
    assert bool(jnp.isfinite(total)), f"non-finite loss: {total}"
    print("KERNEL_OK")
</pallas_src>

<mosaic_0001>
module attributes {stable_mosaic.version = 11 : i64} {
  func.func @_decode_kernel(%arg0: i32, %arg1: i32, %arg2: memref<1x8x1024xf32, #tpu.memory_space<vmem>>, %arg3: memref<8x1024xf32, #tpu.memory_space<vmem>>, %arg4: memref<1x4x1024xf32, #tpu.memory_space<vmem>>) attributes {dimension_semantics = [#tpu.dimension_semantics<parallel>, #tpu.dimension_semantics<parallel>], iteration_bounds = array<i64: 2, 1>, scalar_prefetch = 0 : i64, scratch_operands = 0 : i64, tpu.core_type = #tpu.core_type<tc>, window_params = [{transform_indices = @transform_0, window_bounds = array<i64: 1, 8, 1024>}, {transform_indices = @transform_1, window_bounds = array<i64: 8, 1024>}, {transform_indices = @transform_2, window_bounds = array<i64: 1, 4, 1024>}]} {
    %c0 = arith.constant 0 : index
    %c0_0 = arith.constant 0 : index
    %0 = vector.load %arg3[%c0, %c0_0] : memref<8x1024xf32, #tpu.memory_space<vmem>>, vector<2x1024xf32>
    %c2 = arith.constant 2 : index
    %c0_1 = arith.constant 0 : index
    %1 = vector.load %arg3[%c2, %c0_1] : memref<8x1024xf32, #tpu.memory_space<vmem>>, vector<2x1024xf32>
    %c0_2 = arith.constant 0 : index
    %c0_3 = arith.constant 0 : index
    %c0_4 = arith.constant 0 : index
    %2 = vector.load %arg2[%c0_2, %c0_3, %c0_4] : memref<1x8x1024xf32, #tpu.memory_space<vmem>>, vector<1x2x1024xf32>
    %3 = vector.shape_cast %2 : vector<1x2x1024xf32> to vector<2x1024xf32>
    %4 = arith.addf %3, %0 : vector<2x1024xf32>
    %5 = arith.mulf %4, %1 : vector<2x1024xf32>
    %c0_5 = arith.constant 0 : index
    %c0_6 = arith.constant 0 : index
    %c0_7 = arith.constant 0 : index
    %6 = vector.load %arg4[%c0_5, %c0_6, %c0_7] : memref<1x4x1024xf32, #tpu.memory_space<vmem>>, vector<1x2x1024xf32>
    %7 = vector.shape_cast %6 : vector<1x2x1024xf32> to vector<2x1024xf32>
    %8 = vector.shape_cast %5 : vector<2x1024xf32> to vector<1x2x1024xf32>
    tpu.vector_store %arg4[%c0_5, %c0_6, %c0_7], %8 {strides = array<i32>} : memref<1x4x1024xf32, #tpu.memory_space<vmem>>, vector<1x2x1024xf32>,
    %c0_8 = arith.constant 0 : index
    %c2_9 = arith.constant 2 : index
    %c0_10 = arith.constant 0 : index
    %9 = vector.load %arg2[%c0_8, %c2_9, %c0_10] : memref<1x8x1024xf32, #tpu.memory_space<vmem>>, vector<1x2x1024xf32>
    %10 = vector.shape_cast %9 : vector<1x2x1024xf32> to vector<2x1024xf32>
    %11 = math.exp %10 : vector<2x1024xf32>
    %12 = arith.mulf %11, %1 : vector<2x1024xf32>
    %c0_11 = arith.constant 0 : index
    %c2_12 = arith.constant 2 : index
    %c0_13 = arith.constant 0 : index
    %13 = vector.load %arg4[%c0_11, %c2_12, %c0_13] : memref<1x4x1024xf32, #tpu.memory_space<vmem>>, vector<1x2x1024xf32>
    %14 = vector.shape_cast %13 : vector<1x2x1024xf32> to vector<2x1024xf32>
    %15 = vector.shape_cast %12 : vector<2x1024xf32> to vector<1x2x1024xf32>
    tpu.vector_store %arg4[%c0_11, %c2_12, %c0_13], %15 {strides = array<i32>} : memref<1x4x1024xf32, #tpu.memory_space<vmem>>, vector<1x2x1024xf32>,
    return
  }
  func.func @transform_0(%arg0: i32, %arg1: i32) -> (i32, i32, i32) {
    %c0_i32 = arith.constant 0 : i32
    %c0_i32_0 = arith.constant 0 : i32
    return %arg0, %c0_i32, %arg1 : i32, i32, i32
  }
  func.func @transform_1(%arg0: i32, %arg1: i32) -> (i32, i32) {
    %c0_i32 = arith.constant 0 : i32
    %c0_i32_0 = arith.constant 0 : i32
    return %c0_i32, %arg1 : i32, i32
  }
  func.func @transform_2(%arg0: i32, %arg1: i32) -> (i32, i32, i32) {
    %c0_i32 = arith.constant 0 : i32
    %c0_i32_0 = arith.constant 0 : i32
    return %arg0, %c0_i32, %arg1 : i32, i32, i32
  }
}

</mosaic_0001>

<bundles_post_ra>
// kernel: tpu_custom_call.1
= control target key start
LH: loop header
LB: loop body
LE: loop exit
PB: predicated region body
PF: predicated region fallthrough
CT: control target
= control target key end

     0   :  { %7 = vsyncpa [#allocation3], 0  ;;  %s938_s0 = inlined_call_operand.hbm [shape: f32[2,8,1024], index: 0, kind: input, shape index: {}]   ;;  %s939_s1 = inlined_call_operand.hbm [shape: f32[8,1024], index: 1, kind: input, shape index: {}]   ;;  %s940_s2 = inlined_call_operand.hbm [shape: f32[2,4,1024], index: 2, kind: output, shape index: {}]  }
   0x1   :  { %9 = vsyncpa [#allocation3 + $0x1], 0 }
   0x2   :  { %10 = vsyncpa [#allocation6], 0 }
   0x3   :  { %11 = vsyncpa [#allocation4], 0 }
   0x4   :  { %13 = vsyncpa [#allocation4 + $0x1], 0  ;;  %s717_s9 = smov 0   ;;  %s719_s10 = smov 0  }
   0x5   :  { %s721_s11 = smov 0   ;;  %s723_s12 = smov 0  }
   0x6   :  { %s725_s13 = smov 0   ;;  %s727_s14 = smov 0  }
   0x7 LB: > { %s451_s15 = sadd.s32 4294967295, %s697_s14   ;;  %s452_s16 = sadd.s32 4294967294, %s697_s14   ;;  %s697_s14 = sphi %s727_s14, %s19_s14   ;;  %s693_s13 = sphi %s725_s13, %s957_s13   ;;  %s689_s12 = sphi %s723_s12, %s956_s12   ;;  %s685_s11 = sphi %s721_s11, %s955_s11   ;;  %s681_s10 = sphi %s719_s10, %s954_s10   ;;  %s677_s9 = sphi %s717_s9, %s953_s9  }
   0x8   : > { %p53_p0 = scmp.ne.s32.totalorder %s681_s10, %s677_s9  ;;  %p751_p1 = scmp.eq.s32.totalorder %s451_s15, 0 }
   0x9   : > { %p755_p2 = scmp.eq.s32.totalorder %s451_s15, 1  ;;  %p111_p3 = scmp.eq.s32.totalorder %s452_s16, 1 }
   0xa   : > { %p761_p4 = por %p751_p1, %p53_p0  ;;  %p453_p5 = scmp.ge.s32.totalorder %s697_s14, 1 }
   0xb   : > { %p766_p6 = por %p111_p3, %p53_p0  ;;  %p118_p7 = scmp.lt.s32.totalorder %s697_s14, 3 }
   0xc   : > { %s944_s19 = scalar_select %p761_p4, 1, 0 }
   0xd   : > { %s945_s20 = scalar_select %p766_p6, 1, 0 }
   0xe   : > { %p771_p8 = pnand %p453_p5, %p118_p7  ;;  %s699_s22 = smov [#allocation5]  }
   0xf   : > { %s134_s23 = sshll.u32 %s699_s22, 4  ;;  %s31_s25 = sadd.s32 1, %s693_s13  ;;  %s135_s23 = int_to_ptr.vmem [resolvable:$true] %s134_s23 }
  0x10   : > { %p478_p10 = pneg %p771_p8  ;;  %s40_s26 = sadd.s32 1, %s685_s11 }
  0x11   : > { %p33_p12 = scmp.ge.s32.totalorder %s31_s25, 2  ;;  %s570_s27 = scalar_lea.vmem %s135_s23, 1024 }
  0x12   : > { %p780_p11 = pnand %p478_p10, %p751_p1  ;;  %p571_p0 = scmp.ne.s32.totalorder %s135_s23, %s570_s27 }
  0x13   : > { %p578_p7 = scmp.lt.s32.totalorder %s135_s23, %s135_s23  ;;  %p579_p6 = scmp.lt.s32.totalorder %s570_s27, %s570_s27 }
  0x14   : > { %p561_p13 = pneg %p780_p11 }
  0x15   : > { %p580_p9 = por %p579_p6, %p578_p7 }
  0x16   : > { %p573_p3 = pnand %p571_p0, %p561_p13 }
  0x18   : > { %p574_p5 = pneg %p573_p3 }
  0x1a   : > { %p581_p4 = pnand %p580_p9, %p574_p5 }
  0x1c   : > { %584 = shalt.err (!%p581_p4)
}
  0x1d   : > { %481 = dma.hbm_to_vmem [thread:$0]  (!%p780_p11), %s939_s1, 1024, %s135_s23, [#allocation6]  }
  0x1e   : > { %s959_s25 = smov (%p33_p12, %s31_s25), 0  ;;  %p47_p6 = scmp.ne.s32.totalorder %s685_s11, %s681_s10 }
  0x1f   : > { %p48_p4 = scmp.eq.s32.totalorder %s697_s14, 0  ;;  %s35_s30 = ssub.s32 %s693_s13, %s959_s25 }
  0x20   : > { %p491_p9 = scmp.lt.s32.totalorder %s697_s14, 2  ;;  %p38_p10 = scmp.eq.s32.totalorder %s35_s30, 0 }
  0x21   : > { %p49_p13 = por %p48_p4, %p47_p6  ;;  %p803_p0 = por %p755_p2, %p47_p6 }
  0x22   : > { %s145_s4 = sand.u32 1, %s685_s11   ;;  %s468_s7 = sshll.u32 %s693_s13, 10 }
  0x23   : > { %s809_s5 = scalar_select %p38_p10, %s685_s11, %s40_s26  }
  0x24   : > { %s456_s6 = sshll.u32 %s145_s4, 6  ;;  %s157_s16 = scalar_lea.hbm %s938_s0, %s468_s7 }
  0x25   : > { %s149_s22 = scalar_lea.vmem [#allocation2], %s456_s6  ;;  %p815_p11 = pnand %p491_p9, %p49_p13 }
  0x26   : > { %s159_s23 = sshll.u32 %s149_s22, 4  ;;  %s146_s18 = scalar_lea.sflag [#allocation3], %s145_s4  ;;  %s160_s23 = int_to_ptr.vmem [resolvable:$true] %s159_s23 }
  0x27   : > { %p587_p2 = pneg %p815_p11  ;;  %s598_s27 = scalar_lea.vmem %s160_s23, 1024 }
  0x28   : > { %p599_p12 = scmp.ne.s32.totalorder %s160_s23, %s598_s27  ;;  %s700_s26 = smov [#allocation2]  }
  0x29   : > { %s603_s28 = sshll.u32 %s700_s26, 4  ;;  %s604_s28 = int_to_ptr.vmem [resolvable:$false] %s603_s28 }
  0x2a   : > { %p601_p3 = pnand %p599_p12, %p587_p2  ;;  %s605_s29 = scalar_lea.vmem %s604_s28, 2048 }
  0x2b   : > { %p606_p7 = scmp.lt.s32.totalorder %s160_s23, %s604_s28  ;;  %p607_p6 = scmp.lt.s32.totalorder %s605_s29, %s598_s27 }
  0x2c   : > { %p602_p5 = pneg %p601_p3 }
  0x2d   : > { %p608_p4 = por %p607_p6, %p606_p7 }
  0x2f   : > { %p609_p10 = pnand %p608_p4, %p602_p5 }
  0x31   : > { %612 = shalt.err (!%p609_p10)
}
  0x32   : > { %485 = dma.hbm_to_vmem [thread:$0]  (!%p815_p11), %s157_s16, 1024, %s160_s23, %s146_s18  }
  0x33   : > { %168 = sbr.rel (%p771_p8) target bundleno = 110 (0x6e), region = 28  ;;  %s826_s30 = sand.u32 (!%p771_p8), 1, %s681_s10  }
  0x34   : > { %s460_s4 = sshll.u32 (!%p771_p8), %s826_s30, 6  ;;  %s171_s6 = scalar_lea.sflag (!%p771_p8), [#allocation3], %s826_s30 }
  0x35   : > { %s830_s7 = scalar_lea.vmem (!%p771_p8), [#allocation2], %s460_s4  ;;  %p950_p9 = scmp.ne.s32.totalorder (!%p771_p8), %s944_s19, 0 }
  0x38   : > { %664 = dma.done.wait (%p950_p9), %s171_s6, 1024  }
  0x39   : > { %666 = vsyncadd (%p950_p9), %s171_s6, 4294966272 }
  0x3a   : > { %668 = dma.done.wait (%p751_p1), [#allocation6], 1024  }
  0x3b   : > { %670 = vsyncadd (%p751_p1), [#allocation6], 4294966272  ;;  %s462_s21 = sshll.u32 %s826_s30, 5  ;;  %v202_v0 = vld [vmem:[#allocation5] sm:$0x3]  ;;  %s469_s19 = sshll.u32 %s689_s12, 9 }
  0x3c   : > { %v203_v1 = vld [vmem:[#allocation5 + $0x8] sm:$0x3]  ;;  %v841_v2 = vld [vmem:[#allocation5] sm:$0xc]  ;;  %v843_v3 = vld [vmem:[#allocation5 + $0x8] sm:$0xc]  ;;  %s353_s22 = scalar_lea.hbm %s940_s2, %s469_s19 }
  0x3d   : > { %v218_v4 = vld [vmem:[%s830_s7] sm:$0x3]  ;;  %v219_v5 = vld [vmem:[%s830_s7 + $0x8] sm:$0x3]  ;;  %v242_v8 = vrot.slane %v841_v2, 2  ;;  %v243_v9 = vrot.slane %v843_v3, 2 }
  0x3e   : > { %v226_v6 = vadd.f32 %v218_v4, %v202_v0  ;;  %v227_v7 = vadd.f32 %v219_v5, %v203_v1  ;;  %v204_v10 = vld [vmem:[#allocation5 + $0x10] sm:$0x3]  ;;  %v205_v11 = vld [vmem:[#allocation5 + $0x18] sm:$0x3]  ;;  %v849_v12 = vld [vmem:[#allocation5 + $0x10] sm:$0xc] }
  0x3f   : > { %v851_v13 = vld [vmem:[#allocation5 + $0x18] sm:$0xc]  ;;  %v220_v14 = vld [vmem:[%s830_s7 + $0x10] sm:$0x3]  ;;  %v221_v17 = vld [vmem:[%s830_s7 + $0x18] sm:$0x3] }
  0x40   : > { %v258_v15 = vmul.f32 %v242_v8, %v226_v6  ;;  %v259_v16 = vmul.f32 %v243_v9, %v227_v7  ;;  %v228_v18 = vadd.f32 %v220_v14, %v204_v10  ;;  %v244_v19 = vrot.slane %v849_v12, 2  ;;  %v206_v20 = vld [vmem:[#allocation5 + $0x20] sm:$0x3]  ;;  %v207_v23 = vld [vmem:[#allocation5 + $0x28] sm:$0x3]  ;;  %s866_s17 = scalar_lea.vmem [#allocation7], %s462_s21 }
  0x41   : > { %v229_v21 = vadd.f32 %v221_v17, %v205_v11  ;;  %v245_v22 = vrot.slane %v851_v13, 2  ;;  %v857_v24 = vld [vmem:[#allocation5 + $0x20] sm:$0xc]  ;;  %v859_v27 = vld [vmem:[#allocation5 + $0x28] sm:$0xc]  ;;  %s355_s8 = sshll.u32 %s866_s17, 4  ;;  %s356_s8 = int_to_ptr.vmem [resolvable:$true] %s355_s8 }
  0x42   : > { %v274_v25 = vcombine.low %v258_v15, %v259_v16  ;;  %v260_v26 = vmul.f32 %v244_v19, %v228_v18  ;;  %v222_v28 = vld [vmem:[%s830_s7 + $0x20] sm:$0x3]  ;;  %v223_v29 = vld [vmem:[%s830_s7 + $0x28] sm:$0x3]  ;;  %v246_v33 = vrot.slane %v857_v24, 2  ;;  %v247_v36 = vrot.slane %v859_v27, 2 }
  0x43   : > { %v261_v30 = vmul.f32 %v245_v22, %v229_v21  ;;  %v230_v31 = vadd.f32 %v222_v28, %v206_v20  ;;  %v231_v32 = vadd.f32 %v223_v29, %v207_v23  ;;  %v208_v34 = vld [vmem:[#allocation5 + $0x30] sm:$0x3]  ;;  %v209_v35 = vld [vmem:[#allocation5 + $0x38] sm:$0x3]  ;;  %v216_v37 = vld [vmem:[#allocation5 + $0x30] sm:$0xc] }
  0x44   : > { %282 = vst [vmem:[%s866_s17] sm:$0x33] %v274_v25  ;;  %v870_v38 = vld [vmem:[#allocation5 + $0x38] sm:$0xc]  ;;  %v224_v41 = vld [vmem:[%s830_s7 + $0x30] sm:$0x3]  ;;  %v248_v43 = vrot.slane %v216_v37, 2 }
  0x45   : > { %v275_v39 = vcombine.low %v260_v26, %v261_v30  ;;  %v262_v40 = vmul.f32 %v246_v33, %v230_v31  ;;  %v225_v42 = vld [vmem:[%s830_s7 + $0x38] sm:$0x3]  ;;  %v249_v44 = vrot.slane %v870_v38, 2  ;;  %v263_v45 = vmul.f32 %v247_v36, %v231_v32  ;;  %v286_v48 = vld [vmem:[%s830_s7] sm:$0xc]  ;;  %s339_s23 = scalar_lea.sflag [#allocation4], %s826_s30 }
  0x46   : > { %v232_v46 = vadd.f32 %v224_v41, %v208_v34  ;;  %v233_v47 = vadd.f32 %v225_v42, %v209_v35  ;;  %v287_v49 = vld [vmem:[%s830_s7 + $0x8] sm:$0xc]  ;;  %v288_v50 = vld [vmem:[%s830_s7 + $0x10] sm:$0xc]  ;;  %v294_v51 = vmul.f32 1.442695, %v286_v48 }
  0x47   : > { %283 = vst [vmem:[%s866_s17 + $0x8] sm:$0x33] %v275_v39  ;;  %v296_v52 = vmul.f32 1.442695, %v287_v49  ;;  %v289_v53 = vld [vmem:[%s830_s7 + $0x18] sm:$0xc]  ;;  %v276_v54 = vcombine.low %v262_v40, %v263_v45 }
  0x48   : > { %v264_v55 = vmul.f32 %v248_v43, %v232_v46  ;;  %v265_v56 = vmul.f32 %v249_v44, %v233_v47  ;;  %v298_v57 = vmul.f32 1.442695, %v288_v50  ;;  %v290_v58 = vld [vmem:[%s830_s7 + $0x20] sm:$0xc]  ;;  %v291_v59 = vld [vmem:[%s830_s7 + $0x28] sm:$0xc]  ;;  %543 = vpow2.f32 %v294_v51 }
  0x49   : > { %v300_v60 = vmul.f32 1.442695, %v289_v53  ;;  %v302_v61 = vmul.f32 1.442695, %v290_v58  ;;  %284 = vst [vmem:[%s866_s17 + $0x10] sm:$0x33] %v276_v54  ;;  %545 = vpow2.f32 %v296_v52 }
  0x4a   : > { %v277_v62 = vcombine.low %v264_v55, %v265_v56  ;;  %v304_v63 = vmul.f32 1.442695, %v291_v59  ;;  %v292_v0 = vld [vmem:[%s830_s7 + $0x30] sm:$0xc]  ;;  %v293_v1 = vld [vmem:[%s830_s7 + $0x38] sm:$0xc]  ;;  %547 = vpow2.f32 %v298_v57 }
  0x4b   : > { %v306_v4 = vmul.f32 1.442695, %v292_v0  ;;  %549 = vpow2.f32 %v300_v60  ;;  %v308_v5 = vmul.f32 1.442695, %v293_v1  ;;  %s613_s24 = scalar_lea.vmem %s356_s8, 512  ;;  %s701_s12 = smov [#allocation7]  }
  0x4c   : > { %285 = vst [vmem:[%s866_s17 + $0x18] sm:$0x33] %v277_v62  ;;  %551 = vpow2.f32 %v302_v61  ;;  %p614_p1 = scmp.ne.s32.totalorder %s356_s8, %s613_s24  ;;  %s617_s18 = sshll.u32 %s701_s12, 4  ;;  %s618_s18 = int_to_ptr.vmem [resolvable:$false] %s617_s18 }
  0x4d   : > { %553 = vpow2.f32 %v304_v63  ;;  %s619_s27 = scalar_lea.vmem %s618_s18, 1024  ;;  %p620_p11 = scmp.lt.s32.totalorder %s356_s8, %s618_s18 }
  0x4e   : > { %555 = vpow2.f32 %v306_v4  ;;  %p615_p8 = pnand %p614_p1, %p803_p0  ;;  %p621_p2 = scmp.lt.s32.totalorder %s619_s27, %s613_s24 }
  0x4f   : > { %557 = vpow2.f32 %v308_v5 }
  0x50   : > { %p616_p13 = pneg %p615_p8  ;;  %p622_p12 = por %p621_p2, %p620_p11 }
  0x52   : > { %p623_p3 = pnand %p622_p12, %p616_p13 }
  0x55   : > { %v544_v6 = vpop.eup %543 }
  0x56   : > { %v546_v7 = vpop.eup %545  ;;  %v310_v8 = vmul.f32 %v544_v6, %v841_v2 }
  0x57   : > { %v548_v9 = vpop.eup %547  ;;  %v311_v10 = vmul.f32 %v546_v7, %v843_v3 }
  0x58   : > { %v550_v11 = vpop.eup %549  ;;  %v312_v14 = vmul.f32 %v548_v9, %v849_v12 }
  0x59   : > { %v552_v15 = vpop.eup %551  ;;  %v326_v16 = vcombine.low %v310_v8, %v311_v10  ;;  %v313_v17 = vmul.f32 %v550_v11, %v851_v13 }
  0x5a   : > { %v554_v18 = vpop.eup %553  ;;  %v314_v19 = vmul.f32 %v552_v15, %v857_v24 }
  0x5b   : > { %v556_v20 = vpop.eup %555  ;;  %334 = vst [vmem:[%s866_s17] sm:$0xcc] %v326_v16  ;;  %v327_v2 = vcombine.low %v312_v14, %v313_v17  ;;  %v315_v21 = vmul.f32 %v554_v18, %v859_v27 }
  0x5c   : > { %v558_v3 = vpop.eup %557  ;;  %v316_v22 = vmul.f32 %v556_v20, %v216_v37 }
  0x5d   : > { %335 = vst [vmem:[%s866_s17 + $0x8] sm:$0xcc] %v327_v2  ;;  %v328_v12 = vcombine.low %v314_v19, %v315_v21  ;;  %v317_v23 = vmul.f32 %v558_v3, %v870_v38 }
  0x5f   : > { %336 = vst [vmem:[%s866_s17 + $0x10] sm:$0xcc] %v328_v12  ;;  %v329_v13 = vcombine.low %v316_v22, %v317_v23 }
  0x61   : > { %337 = vst [vmem:[%s866_s17 + $0x18] sm:$0xcc] %v329_v13 }
  0x62   : > { %626 = shalt.err (!%p623_p3)
}
  0x63   : > { %s627_s26 = scalar_lea.hbm %s353_s22, 512  ;;  %s631_s30 = scalar_lea.hbm %s940_s2, 1024 }
  0x64   : > { %p628_p5 = scmp.ne.s32.totalorder %s353_s22, %s627_s26  ;;  %p632_p4 = scmp.lt.s32.totalorder %s353_s22, %s940_s2 }
  0x65   : > { %p633_p10 = scmp.lt.s32.totalorder %s631_s30, %s627_s26 }
  0x66   : > { %p629_p7 = pnand %p628_p5, %p803_p0 }
  0x67   : > { %p634_p9 = por %p633_p10, %p632_p4 }
  0x68   : > { %p630_p6 = pneg %p629_p7 }
  0x6a   : > { %p635_p1 = pnand %p634_p9, %p630_p6 }
  0x6c   : > { %638 = shalt.err (!%p635_p1)
}
  0x6d   : > { %476 = dma.vmem_to_hbm [thread:$0]  (%p803_p0), %s356_s8, 512, %s353_s22, %s339_s23  }
  0x6e PF: > { %s367_s7 = sand.u32 1, %s677_s9   ;;  %p951_p8 = scmp.ne.s32.totalorder %s945_s20, 0 }
  0x6f   : > { %p952_p13 = scmp.ge.s32.totalorder %s697_s14, 2  ;;  %s368_s21 = scalar_lea.sflag [#allocation4], %s367_s7 }
  0x71   : > { %p487_p11 = pnand %p952_p13, %p951_p8 }
  0x73   : > { %p488_p2 = pneg %p487_p11 }
  0x75   : > { %672 = dma.done.wait (%p488_p2), %s368_s21, 512  }
  0x76   : > { %674 = vsyncadd (%p488_p2), %s368_s21, 4294966784  ;;  %s19_s14 = sadd.s32 1, %s697_s14   ;;  %s953_s9 = smov %s681_s10 }
  0x77   : > { %p16_p12 = scmp.ge.s32.totalorder %s19_s14, 4   ;;  %s954_s10 = smov %s685_s11 }
  0x78   : > { %s955_s11 = smov %s809_s5  ;;  %s956_s12 = smov %s693_s13 }
  0x79   : > { %s957_s13 = smov %s959_s25  ;;  %18 = sbr.rel (!%p16_p12) target bundleno = 7 (0x7), region = 78 }
  0x7e   :  { %373 = vsyncpa [#allocation3], 1 }
  0x7f   :  { %375 = vsyncpa [#allocation3 + $0x1], 1 }
  0x80   :  { %376 = vsyncpa [#allocation6], 1 }
  0x81   :  { %377 = vsyncpa [#allocation4], 1 }
  0x82   :  { %379 = vsyncpa [#allocation4 + $0x1], 1 }

</bundles_post_ra>
